<compile_context>
chip_gen: v6e
topology: v6e:2x2x1
jax: 0.10.0
libtpu: 0.0.40
codegen_flags: <defaults>
</compile_context>

<pallas_src>
import jax
import jax.numpy as jnp
from jax.experimental import pallas as pl
from jax.experimental.pallas import tpu as pltpu

# ImageNet constants (the module hard-codes -m/s and 1/s; folding them back
# gives y = x*std + mean).
_IMAGENET_MEAN = (0.485, 0.456, 0.406)
_IMAGENET_STD = (0.229, 0.224, 0.225)

_VMEM_BUDGET_BYTES = 24 * 1024 * 1024   # double-buffered (input + uint8 output) tiles
_VMEM_LIMIT_BYTES = 32 * 1024 * 1024    # scoped VMEM limit, valid on v5e/v6e/v7x
_MIN_GRID_STEPS = 8                     # feed 2 TCs x double-buffer even for small inputs
_MAX_LANE_DIM = 4096                    # widest lane slab considered (multiple of 128)
_MIN_ROWS_FOR_SPLIT = 64                # prefer an L that still leaves rows to tile over


def _reverse_norm_kernel(x_ref, o_ref):
    """One (C, TR, L) tile: y = clamp(x*std + mean, 0, 1) * 255 -> uint8.

    Per-channel constants are compile-time Python scalars (constant-folded into
    the VPU ops); the cast to f32 happens in-kernel so uint8/bf16 inputs are
    read from HBM at their native width.
    """
    for ch in range(x_ref.shape[0]):
        y = x_ref[ch].astype(jnp.float32) * _IMAGENET_STD[ch] + _IMAGENET_MEAN[ch]
        o_ref[ch] = (jnp.clip(y, 0.0, 1.0) * 255.0).astype(jnp.uint8)


def _pick_lane_dim(hw_pad: int) -> int:
    """Widest multiple-of-128 divisor of hw_pad (<= _MAX_LANE_DIM) that still
    leaves >= _MIN_ROWS_FOR_SPLIT rows; otherwise 128 (maximize rows)."""
    m = hw_pad // 128
    divisors = [128 * k for k in range(1, min(m, _MAX_LANE_DIM // 128) + 1) if m % k == 0]
    for lane in reversed(divisors):
        if hw_pad // lane >= _MIN_ROWS_FOR_SPLIT:
            return lane
    return divisors[0]


def _pick_tile_rows(rows: int, lane: int, channels: int, itemsize: int, n_batch: int) -> int:
    """Rows per tile: as large as the VMEM budget allows, but small enough to
    leave >= _MIN_GRID_STEPS total grid steps; multiple of 32 (uint8 native
    sublane tile) or the full extent."""
    # Double-buffered input (itemsize B/elem) + uint8 output (1 B/elem).
    budget_elems = _VMEM_BUDGET_BYTES // (2 * (itemsize + 1))
    rows_vmem = max(8, budget_elems // (channels * lane))
    tiles_wanted = pl.cdiv(_MIN_GRID_STEPS, n_batch)
    rows_split = max(8, rows // tiles_wanted)
    tr = min(rows_vmem, rows_split, rows)
    if tr >= rows:
        return rows                       # full extent is always a legal block dim
    return (tr // 32) * 32 if tr >= 32 else (tr // 8) * 8


def reverse_norm(x: jax.Array) -> jax.Array:
    """Pallas implementation of ReverseNorm.forward. x: (N, 3, H, W), any dtype."""
    if x.ndim != 4 or x.shape[1] != 3:
        raise ValueError(f"expected (N, 3, H, W) input, got {x.shape}")
    n, c, h, w = x.shape
    hw = h * w
    hw_pad = pl.cdiv(hw, 128) * 128
    itemsize = x.dtype.itemsize

    x_flat = x.reshape(n, c, hw)                               # free (contiguous) reshape
    if hw_pad != hw:
        # Odd H*W: one extra XLA pad pass keeps the kernel path lane-dense
        # (unmasked 128-lane stores) instead of using a narrow W as lane dim.
        x_flat = jnp.pad(x_flat, ((0, 0), (0, 0), (0, hw_pad - hw)))

    lane = _pick_lane_dim(hw_pad)
    rows = hw_pad // lane
    tr = _pick_tile_rows(rows, lane, c, itemsize, n)
    x4 = x_flat.reshape(n, c, rows, lane)

    block = (pl.Squeezed(), c, tr, lane)                       # kernel sees (C, TR, L)
    out = pl.pallas_call(
        _reverse_norm_kernel,
        out_shape=jax.ShapeDtypeStruct((n, c, rows, lane), jnp.uint8),
        grid=(n, pl.cdiv(rows, tr)),
        in_specs=[pl.BlockSpec(block, lambda i, t: (i, 0, t, 0))],
        out_specs=pl.BlockSpec(block, lambda i, t: (i, 0, t, 0)),
        compiler_params=pltpu.CompilerParams(
            # Every grid step writes a distinct output block -> fully parallel
            # (lets v7x's two TensorCores split the mem-bound stream).
            dimension_semantics=("parallel", "parallel"),
            vmem_limit_bytes=_VMEM_LIMIT_BYTES,
        ),
    )(x4)

    out = out.reshape(n, c, hw_pad)
    if hw_pad != hw:
        out = out[:, :, :hw]
    return out.reshape(n, c, h, w)


def _reverse_norm_reference(x: jax.Array) -> jax.Array:
    """Pure-JAX reference mirroring the PyTorch forward op-for-op."""
    xf = x.astype(jnp.float32)
    std = jnp.asarray(_IMAGENET_STD, dtype=jnp.float32).reshape(1, 3, 1, 1)
    mean = jnp.asarray(_IMAGENET_MEAN, dtype=jnp.float32).reshape(1, 3, 1, 1)
    y = jnp.clip(xf * std + mean, 0.0, 1.0) * 255.0
    return y.astype(jnp.uint8)


if __name__ == "__main__":
    key = jax.random.PRNGKey(0)
    N, C, H, W = 2, 3, 16, 16   # ReverseNorm implies a 3-channel image input

    # Build a "normalized image" the way a real pipeline would: raw pixels in
    # [0, 1], forward ImageNet normalization applied.
    raw = jax.random.uniform(key, (N, C, H, W), dtype=jnp.float32)
    mean = jnp.asarray(_IMAGENET_MEAN, dtype=jnp.float32).reshape(1, 3, 1, 1)
    std = jnp.asarray(_IMAGENET_STD, dtype=jnp.float32).reshape(1, 3, 1, 1)
    x = (raw - mean) / std      # normalized input, (2, 3, 16, 16) float32

    # Main (lane-dense) path, float32 input.
    out = jax.block_until_ready(reverse_norm(x))
    ref = _reverse_norm_reference(x)
    assert out.shape == (N, C, H, W) and out.dtype == jnp.uint8
    assert bool(jnp.all(out == ref)), "Pallas output mismatch vs reference (f32)"

    # uint8 input path: cast to f32 happens inside the kernel (native-width HBM read).
    x_u8 = (raw * 255.0).astype(jnp.uint8)
    out_u8 = jax.block_until_ready(reverse_norm(x_u8))
    assert bool(jnp.all(out_u8 == _reverse_norm_reference(x_u8))), \
        "Pallas output mismatch vs reference (uint8)"

    # Padded path: H*W not a multiple of 128.
    raw_odd = jax.random.uniform(jax.random.PRNGKey(1), (1, 3, 8, 12), dtype=jnp.float32)
    x_odd = (raw_odd - mean) / std
    out_odd = jax.block_until_ready(reverse_norm(x_odd))
    assert bool(jnp.all(out_odd == _reverse_norm_reference(x_odd))), \
        "Pallas output mismatch vs reference (padded layout)"

    print("KERNEL_OK")
</pallas_src>

<mosaic_0001>
module attributes {stable_mosaic.version = 11 : i64} {
  func.func @_reverse_norm_kernel(%arg0: i32, %arg1: i32, %arg2: memref<1x3x2x128xf32, #tpu.memory_space<vmem>>, %arg3: memref<1x3x2x128xi8, #tpu.memory_space<vmem>>) attributes {dimension_semantics = [#tpu.dimension_semantics<parallel>, #tpu.dimension_semantics<parallel>], iteration_bounds = array<i64: 2, 1>, scalar_prefetch = 0 : i64, scratch_operands = 0 : i64, tpu.core_type = #tpu.core_type<tc>, window_params = [{transform_indices = @transform_0, window_bounds = array<i64: 1, 3, 2, 128>}, {transform_indices = @transform_1, window_bounds = array<i64: 1, 3, 2, 128>}]} {
    %c0 = arith.constant 0 : index
    %c0_0 = arith.constant 0 : index
    %c0_1 = arith.constant 0 : index
    %c0_2 = arith.constant 0 : index
    %0 = vector.load %arg2[%c0, %c0_0, %c0_1, %c0_2] : memref<1x3x2x128xf32, #tpu.memory_space<vmem>>, vector<1x1x2x128xf32>
    %1 = vector.shape_cast %0 : vector<1x1x2x128xf32> to vector<2x128xf32>
    %cst = arith.constant 2.290000e-01 : f32
    %2 = vector.broadcast %cst : f32 to vector<2x128xf32>
    %3 = arith.mulf %1, %2 : vector<2x128xf32>
    %cst_3 = arith.constant 4.850000e-01 : f32
    %4 = vector.broadcast %cst_3 : f32 to vector<2x128xf32>
    %5 = arith.addf %3, %4 : vector<2x128xf32>
    %cst_4 = arith.constant 0.000000e+00 : f32
    %cst_5 = arith.constant 1.000000e+00 : f32
    %6 = vector.broadcast %cst_4 : f32 to vector<2x128xf32>
    %7 = arith.maximumf %6, %5 : vector<2x128xf32>
    %8 = vector.broadcast %cst_5 : f32 to vector<2x128xf32>
    %9 = arith.minimumf %8, %7 : vector<2x128xf32>
    %cst_6 = arith.constant 2.550000e+02 : f32
    %10 = vector.broadcast %cst_6 : f32 to vector<2x128xf32>
    %11 = arith.mulf %9, %10 : vector<2x128xf32>
    %12 = arith.fptoui %11 : vector<2x128xf32> to vector<2x128xi8>
    %c0_7 = arith.constant 0 : index
    %c0_8 = arith.constant 0 : index
    %c0_9 = arith.constant 0 : index
    %c0_10 = arith.constant 0 : index
    %13 = vector.load %arg3[%c0_7, %c0_8, %c0_9, %c0_10] : memref<1x3x2x128xi8, #tpu.memory_space<vmem>>, vector<1x1x2x128xi8>
    %14 = vector.shape_cast %13 : vector<1x1x2x128xi8> to vector<2x128xi8>
    %15 = vector.shape_cast %12 : vector<2x128xi8> to vector<1x1x2x128xi8>
    tpu.vector_store %arg3[%c0_7, %c0_8, %c0_9, %c0_10], %15 {strides = array<i32>} : memref<1x3x2x128xi8, #tpu.memory_space<vmem>>, vector<1x1x2x128xi8>,
    %c0_11 = arith.constant 0 : index
    %c1 = arith.constant 1 : index
    %c0_12 = arith.constant 0 : index
    %c0_13 = arith.constant 0 : index
    %16 = vector.load %arg2[%c0_11, %c1, %c0_12, %c0_13] : memref<1x3x2x128xf32, #tpu.memory_space<vmem>>, vector<1x1x2x128xf32>
    %17 = vector.shape_cast %16 : vector<1x1x2x128xf32> to vector<2x128xf32>
    %cst_14 = arith.constant 2.240000e-01 : f32
    %18 = vector.broadcast %cst_14 : f32 to vector<2x128xf32>
    %19 = arith.mulf %17, %18 : vector<2x128xf32>
    %cst_15 = arith.constant 4.560000e-01 : f32
    %20 = vector.broadcast %cst_15 : f32 to vector<2x128xf32>
    %21 = arith.addf %19, %20 : vector<2x128xf32>
    %cst_16 = arith.constant 0.000000e+00 : f32
    %cst_17 = arith.constant 1.000000e+00 : f32
    %22 = vector.broadcast %cst_16 : f32 to vector<2x128xf32>
    %23 = arith.maximumf %22, %21 : vector<2x128xf32>
    %24 = vector.broadcast %cst_17 : f32 to vector<2x128xf32>
    %25 = arith.minimumf %24, %23 : vector<2x128xf32>
    %cst_18 = arith.constant 2.550000e+02 : f32
    %26 = vector.broadcast %cst_18 : f32 to vector<2x128xf32>
    %27 = arith.mulf %25, %26 : vector<2x128xf32>
    %28 = arith.fptoui %27 : vector<2x128xf32> to vector<2x128xi8>
    %c0_19 = arith.constant 0 : index
    %c1_20 = arith.constant 1 : index
    %c0_21 = arith.constant 0 : index
    %c0_22 = arith.constant 0 : index
    %29 = vector.load %arg3[%c0_19, %c1_20, %c0_21, %c0_22] : memref<1x3x2x128xi8, #tpu.memory_space<vmem>>, vector<1x1x2x128xi8>
    %30 = vector.shape_cast %29 : vector<1x1x2x128xi8> to vector<2x128xi8>
    %31 = vector.shape_cast %28 : vector<2x128xi8> to vector<1x1x2x128xi8>
    tpu.vector_store %arg3[%c0_19, %c1_20, %c0_21, %c0_22], %31 {strides = array<i32>} : memref<1x3x2x128xi8, #tpu.memory_space<vmem>>, vector<1x1x2x128xi8>,
    %c0_23 = arith.constant 0 : index
    %c2 = arith.constant 2 : index
    %c0_24 = arith.constant 0 : index
    %c0_25 = arith.constant 0 : index
    %32 = vector.load %arg2[%c0_23, %c2, %c0_24, %c0_25] : memref<1x3x2x128xf32, #tpu.memory_space<vmem>>, vector<1x1x2x128xf32>
    %33 = vector.shape_cast %32 : vector<1x1x2x128xf32> to vector<2x128xf32>
    %cst_26 = arith.constant 2.250000e-01 : f32
    %34 = vector.broadcast %cst_26 : f32 to vector<2x128xf32>
    %35 = arith.mulf %33, %34 : vector<2x128xf32>
    %cst_27 = arith.constant 4.060000e-01 : f32
    %36 = vector.broadcast %cst_27 : f32 to vector<2x128xf32>
    %37 = arith.addf %35, %36 : vector<2x128xf32>
    %cst_28 = arith.constant 0.000000e+00 : f32
    %cst_29 = arith.constant 1.000000e+00 : f32
    %38 = vector.broadcast %cst_28 : f32 to vector<2x128xf32>
    %39 = arith.maximumf %38, %37 : vector<2x128xf32>
    %40 = vector.broadcast %cst_29 : f32 to vector<2x128xf32>
    %41 = arith.minimumf %40, %39 : vector<2x128xf32>
    %cst_30 = arith.constant 2.550000e+02 : f32
    %42 = vector.broadcast %cst_30 : f32 to vector<2x128xf32>
    %43 = arith.mulf %41, %42 : vector<2x128xf32>
    %44 = arith.fptoui %43 : vector<2x128xf32> to vector<2x128xi8>
    %c0_31 = arith.constant 0 : index
    %c2_32 = arith.constant 2 : index
    %c0_33 = arith.constant 0 : index
    %c0_34 = arith.constant 0 : index
    %45 = vector.load %arg3[%c0_31, %c2_32, %c0_33, %c0_34] : memref<1x3x2x128xi8, #tpu.memory_space<vmem>>, vector<1x1x2x128xi8>
    %46 = vector.shape_cast %45 : vector<1x1x2x128xi8> to vector<2x128xi8>
    %47 = vector.shape_cast %44 : vector<2x128xi8> to vector<1x1x2x128xi8>
    tpu.vector_store %arg3[%c0_31, %c2_32, %c0_33, %c0_34], %47 {strides = array<i32>} : memref<1x3x2x128xi8, #tpu.memory_space<vmem>>, vector<1x1x2x128xi8>,
    return
  }
  func.func @transform_0(%arg0: i32, %arg1: i32) -> (i32, i32, i32, i32) {
    %c0_i32 = arith.constant 0 : i32
    %c0_i32_0 = arith.constant 0 : i32
    %c0_i32_1 = arith.constant 0 : i32
    return %arg0, %c0_i32, %arg1, %c0_i32_0 : i32, i32, i32, i32
  }
  func.func @transform_1(%arg0: i32, %arg1: i32) -> (i32, i32, i32, i32) {
    %c0_i32 = arith.constant 0 : i32
    %c0_i32_0 = arith.constant 0 : i32
    %c0_i32_1 = arith.constant 0 : i32
    return %arg0, %c0_i32, %arg1, %c0_i32_0 : i32, i32, i32, i32
  }
}

</mosaic_0001>

<bundles_post_ra>
// kernel: tpu_custom_call.1
= control target key start
LH: loop header
LB: loop body
LE: loop exit
PB: predicated region body
PF: predicated region fallthrough
CT: control target
= control target key end

     0   :  { %6 = vsyncpa [#allocation3], 0  ;;  %s556_s0 = inlined_call_operand.hbm [shape: f32[2,3,2,128], index: 0, kind: input, shape index: {}]   ;;  %s557_s1 = inlined_call_operand.vmem [shape: u8[2,3,2,128], index: 1, kind: output, shape index: {}]  }
   0x1   :  { %8 = vsyncpa [#allocation3 + $0x1], 0  ;;  %s466_s6 = smov 0   ;;  %s468_s7 = smov 0  }
   0x2   :  { %s470_s8 = smov 0   ;;  %s472_s9 = smov 0  }
   0x3   :  { %s474_s10 = smov 0   ;;  %s476_s11 = smov 0  }
   0x4 LB: > { %s292_s12 = sadd.s32 4294967295, %s451_s11   ;;  %s26_s13 = sadd.s32 1, %s447_s10  ;;  %s451_s11 = sphi %s476_s11, %s14_s11   ;;  %s447_s10 = sphi %s474_s10, %s564_s10   ;;  %s443_s9 = sphi %s472_s9, %s563_s9   ;;  %s439_s8 = sphi %s470_s8, %s562_s8   ;;  %s435_s7 = sphi %s468_s7, %s561_s7   ;;  %s431_s6 = sphi %s466_s6, %s560_s6  }
   0x5   : > { %p28_p0 = scmp.ge.s32.totalorder %s26_s13, 2  ;;  %s35_s14 = sadd.s32 1, %s439_s8 }
   0x6   : > { %p42_p1 = scmp.ne.s32.totalorder %s439_s8, %s435_s7  ;;  %p43_p2 = scmp.eq.s32.totalorder %s451_s11, 0 }
   0x7   : > { %s566_s13 = smov (%p28_p0, %s26_s13), 0  ;;  %p48_p4 = scmp.ne.s32.totalorder %s435_s7, %s431_s6 }
   0x8   : > { %p44_p3 = por %p43_p2, %p42_p1  ;;  %s30_s15 = ssub.s32 %s447_s10, %s566_s13 }
   0x9   : > { %p49_p5 = scmp.eq.s32.totalorder %s292_s12, 0  ;;  %p33_p6 = scmp.eq.s32.totalorder %s30_s15, 0 }
   0xa   : > { %p322_p8 = scmp.lt.s32.totalorder %s451_s11, 2  ;;  %s100_s18 = sand.u32 1, %s439_s8  }
   0xb   : > { %p505_p7 = por %p49_p5, %p48_p4  ;;  %s307_s19 = smul.u32 96, %s447_s10 }
   0xc   : > { %s511_s17 = scalar_select %p33_p6, %s439_s8, %s35_s14  }
   0xd   : > { %s306_s20 = smul.u32 6, %s100_s18  ;;  %s111_s23 = scalar_lea.hbm %s556_s0, %s307_s19 }
   0xe   : > { %p518_p9 = pnand %p322_p8, %p44_p3  ;;  %s101_s27 = scalar_lea.sflag [#allocation3], %s100_s18 }
   0xf   : > { %s104_s25 = scalar_lea.vmem [#allocation2], %s306_s20  ;;  %s453_s29 = smov [#allocation2]  }
  0x10   : > { %s112_s26 = sshll.u32 %s104_s25, 4  ;;  %p375_p10 = pneg %p518_p9  ;;  %s113_s26 = int_to_ptr.vmem [resolvable:$true] %s112_s26 }
  0x11   : > { %s386_s28 = scalar_lea.vmem %s113_s26, 96  ;;  %s391_s30 = sshll.u32 %s453_s29, 4  ;;  %s392_s30 = int_to_ptr.vmem [resolvable:$false] %s391_s30 }
  0x12   : > { %p387_p11 = scmp.ne.s32.totalorder %s113_s26, %s386_s28  ;;  %s393_s2 = scalar_lea.vmem %s392_s30, 192 }
  0x13   : > { %p394_p0 = scmp.lt.s32.totalorder %s113_s26, %s392_s30  ;;  %p395_p1 = scmp.lt.s32.totalorder %s393_s2, %s386_s28 }
  0x14   : > { %p389_p12 = pnand %p387_p11, %p375_p10 }
  0x15   : > { %p396_p2 = por %p395_p1, %p394_p0 }
  0x16   : > { %p390_p13 = pneg %p389_p12 }
  0x18   : > { %p397_p3 = pnand %p396_p2, %p390_p13 }
  0x1a   : > { %400 = shalt.err (!%p397_p3)
}
  0x1b   : > { %s454_s3 = smov 32   ;;  %s455_s4 = smov 2  }
  0x1c   : > { %321 = dma.hbm_to_vmem [thread:$0]  (!%p518_p9), %s111_s23, 96, %s113_s26, %s101_s27, %s454_s3, %s454_s3, %s455_s4  }
  0x1d   : > { %p297_p4 = scmp.ge.s32.totalorder %s451_s11, 1  ;;  %p120_p5 = scmp.lt.s32.totalorder %s451_s11, 3 }
  0x1f   : > { %p121_p6 = pnand %p297_p4, %p120_p5 }
  0x20   : > { %s126_s5 = sand.u32 (!%p121_p6), 1, %s435_s7  }
  0x21   : > { %124 = sbr.rel (%p121_p6) target bundleno = 65 (0x41), region = 24  ;;  %s127_s12 = scalar_lea.sflag (!%p121_p6), [#allocation3], %s126_s5 }
  0x22   : > { %s308_s6 = smul.u32 (!%p121_p6), 6, %s126_s5 }
  0x24   : > { %s130_s14 = scalar_lea.vmem (!%p121_p6), [#allocation2], %s308_s6 }
  0x26   : > { %426 = dma.done.wait (%p505_p7), %s127_s12, 96  }
  0x27   : > { %428 = vsyncadd (%p505_p7), %s127_s12, 4294967200  ;;  %v158_v0 = vld [vmem:[%s130_s14] sm:$0x3]  ;;  %v298_v1 = vld [vmem:[%s130_s14 + $0x2] sm:$0x3]  ;;  %p151_p8 = scmp.lt.s32.totalorder %s443_s9, 1 }
  0x28   : > { %v159_v2 = vmul.f32 0.229, %v158_v0  ;;  %v177_v3 = vmul.f32 0.224, %v298_v1  ;;  %v301_v4 = vld [vmem:[%s130_s14 + $0x4] sm:$0x3] }
  0x29   : > { %v193_v7 = vmul.f32 0.225, %v301_v4  ;;  %s568_s9 = smov (!%p151_p8, %s443_s9), 1  ;;  %vm169_vm0 = vcmask 1040384   ;;  %vm170_vm1 = vsmask.f32 256 }
  0x2a   : > { %v160_v5 = vadd.f32 0.485, %v159_v2  ;;  %v178_v6 = vadd.f32 0.456, %v177_v3  ;;  %s309_s15 = smul.u32 3, %s568_s9  ;;  %vm171_vm2 = vmand %vm169_vm0, %vm170_vm1 }
  0x2b   : > { %v194_v10 = vadd.f32 0.406, %v193_v7 }
  0x2c   : > { %v161_v8 = vmax.f32 %v160_v5, 0.0  ;;  %v179_v9 = vmax.f32 %v178_v6, 0.0  ;;  %s157_s19 = scalar_lea.vmem %s557_s1, %s309_s15 }
  0x2d   : > { %v195_v13 = vmax.f32 %v194_v10, 0.0  ;;  %v172_v32 = vld [vmem:[%s157_s19] sm:$0x1]  ;;  %v299_v33 = vld [vmem:[%s157_s19 + $0x1] sm:$0x1] }
  0x2e   : > { %v162_v11 = vmin.f32 %v161_v8, 1.0  ;;  %v180_v12 = vmin.f32 %v179_v9, 1.0  ;;  %v302_v37 = vld [vmem:[%s157_s19 + $0x2] sm:$0x1] }
  0x2f   : > { %v196_v16 = vmin.f32 %v195_v13, 1.0 }
  0x30   : > { %v163_v14 = vmul.f32 255.0, %v162_v11  ;;  %v181_v15 = vmul.f32 255.0, %v180_v12 }
  0x31   : > { %v197_v19 = vmul.f32 255.0, %v196_v16 }
  0x32   : > { %v164_v17 = vmax.f32 %v163_v14, 0.0  ;;  %v182_v18 = vmax.f32 %v181_v15, 0.0 }
  0x33   : > { %v198_v22 = vmax.f32 %v197_v19, 0.0 }
  0x34   : > { %v165_v20 = vmin.f32 %v164_v17, 255.0  ;;  %v183_v21 = vmin.f32 %v182_v18, 255.0 }
  0x35   : > { %v199_v25 = vmin.f32 %v198_v22, 255.0 }
  0x36   : > { %v310_v23 = vtrunc.f32 %v165_v20  ;;  %v312_v24 = vtrunc.f32 %v183_v21 }
  0x37   : > { %v314_v28 = vtrunc.f32 %v199_v25 }
  0x38   : > { %v311_v26 = vcvt.f32.s32 %v310_v23  ;;  %v313_v27 = vcvt.f32.s32 %v312_v24 }
  0x39   : > { %v315_v31 = vcvt.f32.s32 %v314_v28 }
  0x3a   : > { %v167_v29 = vpack.c.b16 %v311_v26, %v311_v26  ;;  %v185_v30 = vpack.c.b16 %v313_v27, %v313_v27 }
  0x3b   : > { %v201_v36 = vpack.c.b16 %v315_v31, %v315_v31 }
  0x3c   : > { %v168_v34 = vpack.c.b8 %v167_v29, %v167_v29  ;;  %v186_v35 = vpack.c.b8 %v185_v30, %v185_v30 }
  0x3d   : > { %v202_v40 = vpack.c.b8 %v201_v36, %v201_v36 }
  0x3e   : > { %v173_v38 = vsel %vm171_vm2, %v168_v34, %v172_v32  ;;  %v189_v39 = vsel %vm171_vm2, %v186_v35, %v299_v33 }
  0x3f   : > { %174 = vst [vmem:[%s157_s19] sm:$0x1] %v173_v38  ;;  %300 = vst [vmem:[%s157_s19 + $0x1] sm:$0x1] %v189_v39  ;;  %v205_v41 = vsel %vm171_vm2, %v202_v40, %v302_v37 }
  0x40   : > { %303 = vst [vmem:[%s157_s19 + $0x2] sm:$0x1] %v205_v41 }
  0x41 PF: > { %s14_s11 = sadd.s32 1, %s451_s11   ;;  %s560_s6 = smov %s435_s7 }
  0x42   : > { %p11_p7 = scmp.ge.s32.totalorder %s14_s11, 4   ;;  %s561_s7 = smov %s439_s8 }
  0x43   : > { %s562_s8 = smov %s511_s17  ;;  %s563_s9 = smov %s447_s10 }
  0x44   : > { %s564_s10 = smov %s566_s13  ;;  %13 = sbr.rel (!%p11_p7) target bundleno = 4 (0x4), region = 68 }
  0x49   :  { %232 = vsyncpa [#allocation3], 1 }
  0x4a   :  { %234 = vsyncpa [#allocation3 + $0x1], 1 }

</bundles_post_ra>
